<compile_context>
chip_gen: v7x
topology: tpu7x:2x2x1
jax: 0.10.0
libtpu: 0.0.40
codegen_flags: <defaults>
</compile_context>

<pallas_src>
import math
import numpy as np
import jax
import jax.numpy as jnp
from jax.experimental import pallas as pl
from jax.experimental.pallas import tpu as pltpu


def _round_up(x, m):
    return (x + m - 1) // m * m


def _cdiv(a, b):
    return -(-a // b)


def _vmem_capacity_bytes():
    try:
        return int(pltpu.get_tpu_info().vmem_capacity_bytes)
    except Exception:
        return 64 * 1024 * 1024  # conservative fallback (v7x per-TC VMEM)


def _auto_tile_rows(Ws, C4, Cout, Mx, vmem_bytes):
    """Pick the M-tile (row) size: multiple of lcm(Ws, 16), sized against VMEM."""
    unit = math.lcm(Ws, 16)
    limit = int(min(vmem_bytes * 3 // 4, 128 * 1024 * 1024))
    weight_bytes = 2 * (4 * C4 * Cout * 2)                 # double-buffered bf16 tap weights
    # per-row VMEM: 2 bf16 inputs (double-buffered) + f32 out (double-buffered) + f32 temps
    per_row = 8 * C4 + 16 * Cout + 32
    budget = max(limit // 3 - weight_bytes, unit * per_row)
    tm = budget // per_row
    tm = max(unit, tm // unit * unit)
    tm = min(tm, _round_up(Mx, unit))
    tm = min(tm, max(unit, 8192 // unit * unit))
    return int(tm), limit


def down_light_forward(x_nchw, w, b, gamma, beta, eps=1e-5, tm=None):
    """x_nchw: (N, Cin, H, W); w: (Cout, Cin, 4, 4); b/gamma/beta: (Cout,).

    `b` is accepted for API parity with nn.Conv2d but is mathematically a no-op under
    training-mode BatchNorm (cancelled by mean subtraction), so it is not used.
    """
    del b
    N, Cin, H, W = x_nchw.shape
    Cout = w.shape[0]
    P = 1
    Ho = (H + 2 * P - 4) // 2 + 1
    Wo = (W + 2 * P - 4) // 2 + 1
    Hs, Ws = Ho + 1, Wo + 1          # space-to-depth grid (one extra row / col of halo)
    C4 = 4 * Cin                     # channels after space-to-depth by 2
    M = N * Ho * Wo                  # number of real output positions
    Mx = N * Ho * Ws                 # extended rows: one throwaway column per output row

    vmem_bytes = _vmem_capacity_bytes()
    auto_tm, vmem_limit = _auto_tile_rows(Ws, C4, Cout, Mx, vmem_bytes)
    if tm is None:
        tm = auto_tm
    # correctness requires tm % Ws == 0 (the wrapped shift row lands in the throwaway
    # column); 8/16-row alignment keeps the bf16 sublane layout clean.
    tm = int(_round_up(max(int(tm), 1), math.lcm(Ws, 8)))

    n_tiles = _cdiv(Mx, tm)
    n_splits = 2 if n_tiles > 1 else 1           # v7x megacore split of the stats pass
    n_half = _cdiv(n_tiles, n_splits)
    Mxp = n_splits * n_half * tm
    n_tiles_p2 = Mxp // tm

    # ---- XLA prep (single pass over the input) ----
    xb = jnp.transpose(x_nchw.astype(jnp.bfloat16), (0, 2, 3, 1))          # NHWC bf16
    pad_b = 2 * Hs - H - 1
    pad_r = 2 * Ws - W - 1
    xp = jnp.pad(xb, ((0, 0), (P, pad_b), (P, pad_r), (0, 0)))             # (N, 2Hs, 2Ws, Cin)
    xs = (xp.reshape(N, Hs, 2, Ws, 2, Cin)
             .transpose(0, 1, 3, 2, 4, 5)
             .reshape(N, Hs, Ws, C4))                                      # space-to-depth
    r0 = xs[:, 0:Ho].reshape(Mx, C4)                                       # dh = 0 rows
    r1 = xs[:, 1:Hs].reshape(Mx, C4)                                       # dh = 1 rows
    r0 = jnp.pad(r0, ((0, Mxp - Mx), (0, 0)))
    r1 = jnp.pad(r1, ((0, Mxp - Mx), (0, 0)))

    # weights: (Cout,Cin,kh,kw) -> per-tap (dh,dw) matrices of shape (C4, Cout), bf16
    w4 = jnp.transpose(w, (2, 3, 1, 0)).reshape(2, 2, 2, 2, Cin, Cout)     # (dh,a,dw,b,ci,co)
    w4 = w4.transpose(0, 2, 1, 3, 4, 5).reshape(4, C4, Cout).astype(jnp.bfloat16)

    # -------------------- kernels (closures over static shape constants) --------------------
    def conv_tile(r0_ref, r1_ref, w_ref):
        r0b = r0_ref[...]
        r1b = r1_ref[...]
        a0 = jnp.dot(r0b, w_ref[0], preferred_element_type=jnp.float32)    # dh=0, dw=0
        a0 = a0 + jnp.dot(r1b, w_ref[2], preferred_element_type=jnp.float32)  # dh=1, dw=0
        a1 = jnp.dot(r0b, w_ref[1], preferred_element_type=jnp.float32)    # dh=0, dw=1
        a1 = a1 + jnp.dot(r1b, w_ref[3], preferred_element_type=jnp.float32)  # dh=1, dw=1
        # dw = 1 taps read the *next* extended row: shift the dw=1 partial up one row.
        # The wrapped last row lands in the throwaway column (tm % Ws == 0), never used.
        a1 = jnp.concatenate([a1[1:, :], a1[:1, :]], axis=0)
        return a0 + a1

    def stats_kernel(r0_ref, r1_ref, w_ref, stats_ref, acc_ref):
        i = pl.program_id(1)

        @pl.when(i == 0)
        def _():
            acc_ref[...] = jnp.zeros_like(acc_ref)

        conv = conv_tile(r0_ref, r1_ref, w_ref)                            # (tm, Cout) f32
        base = (pl.program_id(0) * n_half + i) * tm
        p = base + jax.lax.broadcasted_iota(jnp.int32, (tm, 1), 0)
        valid = (p < Mx) & ((p % Ws) != (Ws - 1))     # drop M-padding + throwaway column
        cm = jnp.where(valid, conv, 0.0)
        upd = jnp.concatenate(
            [jnp.sum(cm, axis=0, keepdims=True),
             jnp.sum(cm * cm, axis=0, keepdims=True)], axis=0)             # (2, Cout)
        acc_ref[0:2, :] = acc_ref[0:2, :] + upd

        @pl.when(i == pl.num_programs(1) - 1)
        def _():
            stats_ref[...] = acc_ref[...]

    def apply_kernel(r0_ref, r1_ref, w_ref, ss_ref, o_ref):
        conv = conv_tile(r0_ref, r1_ref, w_ref)
        y = conv * ss_ref[0:1, :] + ss_ref[1:2, :]
        o_ref[...] = jnp.where(y > 0, y, 0.1 * y).astype(o_ref.dtype)

    # -------------------- pass 1: stats only (no conv intermediate in HBM) --------------------
    stats = pl.pallas_call(
        stats_kernel,
        out_shape=jax.ShapeDtypeStruct((n_splits * 8, Cout), jnp.float32),
        grid=(n_splits, n_half),
        in_specs=[
            pl.BlockSpec((tm, C4), lambda c, i: (c * n_half + i, 0)),
            pl.BlockSpec((tm, C4), lambda c, i: (c * n_half + i, 0)),
            pl.BlockSpec((4, C4, Cout), lambda c, i: (0, 0, 0)),
        ],
        out_specs=pl.BlockSpec((8, Cout), lambda c, i: (c, 0)),
        scratch_shapes=[pltpu.VMEM((8, Cout), jnp.float32)],
        compiler_params=pltpu.CompilerParams(
            dimension_semantics=("parallel", "arbitrary"),
            vmem_limit_bytes=vmem_limit),
    )(r0, r1, w4)

    # ---- fold batch stats + BN affine into per-channel scale/shift (tiny XLA glue) ----
    sums = stats.reshape(n_splits, 8, Cout)[:, 0:2, :].sum(axis=0)         # (2, Cout)
    mean = sums[0] / M
    var = jnp.maximum(sums[1] / M - mean * mean, 0.0)                      # biased (training BN)
    scale = gamma.astype(jnp.float32) * jax.lax.rsqrt(var + eps)
    shift = beta.astype(jnp.float32) - mean * scale
    ss = jnp.stack([scale, shift], axis=0)                                 # (2, Cout)

    # -------------------- pass 2: recompute conv + BN affine + LeakyReLU --------------------
    ext = pl.pallas_call(
        apply_kernel,
        out_shape=jax.ShapeDtypeStruct((Mxp, Cout), jnp.float32),
        grid=(n_tiles_p2,),
        in_specs=[
            pl.BlockSpec((tm, C4), lambda i: (i, 0)),
            pl.BlockSpec((tm, C4), lambda i: (i, 0)),
            pl.BlockSpec((4, C4, Cout), lambda i: (0, 0, 0)),
            pl.BlockSpec((2, Cout), lambda i: (0, 0)),
        ],
        out_specs=pl.BlockSpec((tm, Cout), lambda i: (i, 0)),
        compiler_params=pltpu.CompilerParams(
            dimension_semantics=("parallel",),
            vmem_limit_bytes=vmem_limit),
    )(r0, r1, w4, ss)

    # TODO(synk): consumers that accept NHWC could take ext directly (drop the throwaway
    # column + transpose below); kept NCHW here to match the PyTorch module's output layout.
    y = ext[:Mx].reshape(N, Ho, Ws, Cout)[:, :, :Wo, :]
    return jnp.transpose(y, (0, 3, 1, 2))


def _reference(x, w, b, gamma, beta, eps=1e-5):
    conv = jax.lax.conv_general_dilated(
        x, jnp.transpose(w, (2, 3, 1, 0)), window_strides=(2, 2),
        padding=((1, 1), (1, 1)), dimension_numbers=('NCHW', 'HWIO', 'NCHW'))
    conv = conv + b.reshape(1, -1, 1, 1)
    m = conv.mean(axis=(0, 2, 3), keepdims=True)
    v = ((conv - m) ** 2).mean(axis=(0, 2, 3), keepdims=True)
    y = (conv - m) * jax.lax.rsqrt(v + eps) * gamma.reshape(1, -1, 1, 1) + \
        beta.reshape(1, -1, 1, 1)
    return jnp.where(y > 0, y, 0.1 * y)


if __name__ == "__main__":
    key = jax.random.PRNGKey(0)
    k_x, k_w, k_b, k_x2 = jax.random.split(key, 4)

    N, Cin, H, W = 2, 4, 16, 16
    Cout = 8

    x = jax.random.normal(k_x, (N, Cin, H, W), dtype=jnp.float32)

    # deterministic param init (PyTorch-like uniform bounds)
    fan_in = Cin * 4 * 4
    bound = 1.0 / np.sqrt(fan_in)
    w = jax.random.uniform(k_w, (Cout, Cin, 4, 4), jnp.float32, -bound, bound)
    b = jax.random.uniform(k_b, (Cout,), jnp.float32, -bound, bound)
    gamma = jnp.ones((Cout,), jnp.float32)   # BN weight init
    beta = jnp.zeros((Cout,), jnp.float32)   # BN bias init

    # reference on bf16-rounded operands (kernel feeds the MXU bf16 with f32 accumulation)
    x_bf = x.astype(jnp.bfloat16).astype(jnp.float32)
    w_bf = w.astype(jnp.bfloat16).astype(jnp.float32)
    ref = _reference(x_bf, w_bf, b, gamma, beta)

    # config A: auto tile size (single tile, single split)
    out_a = jax.block_until_ready(down_light_forward(x, w, b, gamma, beta))
    np.testing.assert_allclose(np.asarray(out_a), np.asarray(ref), rtol=2e-3, atol=2e-3)

    # config B: larger batch + explicit tm=72 -> pass-1 grid (2, 2): exercises the megacore
    # split, the multi-step stats accumulation, and the row masking.
    x2 = jax.random.normal(k_x2, (4, Cin, H, W), dtype=jnp.float32)
    x2_bf = x2.astype(jnp.bfloat16).astype(jnp.float32)
    ref2 = _reference(x2_bf, w_bf, b, gamma, beta)
    out_b = jax.block_until_ready(down_light_forward(x2, w, b, gamma, beta, tm=72))
    np.testing.assert_allclose(np.asarray(out_b), np.asarray(ref2), rtol=2e-3, atol=2e-3)

    print("KERNEL_OK")
</pallas_src>

<mosaic_0001>
module attributes {stable_mosaic.version = 11 : i64} {
  func.func @stats_kernel(%arg0: i32, %arg1: i32, %arg2: memref<144x16xbf16, #tpu.memory_space<vmem>>, %arg3: memref<144x16xbf16, #tpu.memory_space<vmem>>, %arg4: memref<4x16x8xbf16, #tpu.memory_space<vmem>>, %arg5: memref<8x8xf32, #tpu.memory_space<vmem>>, %arg6: memref<8x8xf32, #tpu.memory_space<vmem>>) attributes {dimension_semantics = [#tpu.dimension_semantics<parallel>, #tpu.dimension_semantics<arbitrary>], iteration_bounds = array<i64: 1, 1>, scalar_prefetch = 0 : i64, scratch_operands = 1 : i64, tpu.core_type = #tpu.core_type<tc>, window_params = [{transform_indices = @transform_0, window_bounds = array<i64: 144, 16>}, {transform_indices = @transform_1, window_bounds = array<i64: 144, 16>}, {pipeline_mode = #tpu.pipeline_mode<synchronous>, transform_indices = @transform_2, window_bounds = array<i64: 4, 16, 8>}, {transform_indices = @transform_3, window_bounds = array<i64: 8, 8>}]} {
    %c0_i32 = arith.constant 0 : i32
    %0 = arith.cmpi eq, %arg1, %c0_i32 : i32
    %1 = arith.extui %0 : i1 to i32
    %c0_i32_0 = arith.constant 0 : i32
    %2 = arith.cmpi ne, %1, %c0_i32_0 : i32
    scf.if %2 {
      %cst_31 = arith.constant 0.000000e+00 : f32
      %66 = vector.broadcast %cst_31 : f32 to vector<8x8xf32>
      %c0_32 = arith.constant 0 : index
      %c0_33 = arith.constant 0 : index
      %67 = vector.load %arg6[%c0_32, %c0_33] : memref<8x8xf32, #tpu.memory_space<vmem>>, vector<8x8xf32>
      tpu.vector_store %arg6[%c0_32, %c0_33], %66 {strides = array<i32>} : memref<8x8xf32, #tpu.memory_space<vmem>>, vector<8x8xf32>,
    } else {
    }
    %c0 = arith.constant 0 : index
    %c0_1 = arith.constant 0 : index
    %3 = vector.load %arg2[%c0, %c0_1] : memref<144x16xbf16, #tpu.memory_space<vmem>>, vector<144x16xbf16>
    %c0_2 = arith.constant 0 : index
    %c0_3 = arith.constant 0 : index
    %4 = vector.load %arg3[%c0_2, %c0_3] : memref<144x16xbf16, #tpu.memory_space<vmem>>, vector<144x16xbf16>
    %c0_4 = arith.constant 0 : index
    %c0_5 = arith.constant 0 : index
    %c0_6 = arith.constant 0 : index
    %5 = vector.load %arg4[%c0_4, %c0_5, %c0_6] : memref<4x16x8xbf16, #tpu.memory_space<vmem>>, vector<1x16x8xbf16>
    %6 = vector.shape_cast %5 : vector<1x16x8xbf16> to vector<16x8xbf16>
    %cst = arith.constant dense<0.000000e+00> : vector<144x8xf32>
    %7 = tpu.matmul %3, %6, %cst {dimension_numbers = #tpu.dot_dimension_numbers<[1], [0], [0], [1], [0, 0, 1, 1], [], []>} : vector<144x16xbf16>, vector<16x8xbf16>, vector<144x8xf32> -> vector<144x8xf32>
    %c2 = arith.constant 2 : index
    %c0_7 = arith.constant 0 : index
    %c0_8 = arith.constant 0 : index
    %8 = vector.load %arg4[%c2, %c0_7, %c0_8] : memref<4x16x8xbf16, #tpu.memory_space<vmem>>, vector<1x16x8xbf16>
    %9 = vector.shape_cast %8 : vector<1x16x8xbf16> to vector<16x8xbf16>
    %cst_9 = arith.constant dense<0.000000e+00> : vector<144x8xf32>
    %10 = tpu.matmul %4, %9, %cst_9 {dimension_numbers = #tpu.dot_dimension_numbers<[1], [0], [0], [1], [0, 0, 1, 1], [], []>} : vector<144x16xbf16>, vector<16x8xbf16>, vector<144x8xf32> -> vector<144x8xf32>
    %11 = arith.addf %7, %10 : vector<144x8xf32>
    %c1 = arith.constant 1 : index
    %c0_10 = arith.constant 0 : index
    %c0_11 = arith.constant 0 : index
    %12 = vector.load %arg4[%c1, %c0_10, %c0_11] : memref<4x16x8xbf16, #tpu.memory_space<vmem>>, vector<1x16x8xbf16>
    %13 = vector.shape_cast %12 : vector<1x16x8xbf16> to vector<16x8xbf16>
    %cst_12 = arith.constant dense<0.000000e+00> : vector<144x8xf32>
    %14 = tpu.matmul %3, %13, %cst_12 {dimension_numbers = #tpu.dot_dimension_numbers<[1], [0], [0], [1], [0, 0, 1, 1], [], []>} : vector<144x16xbf16>, vector<16x8xbf16>, vector<144x8xf32> -> vector<144x8xf32>
    %c3 = arith.constant 3 : index
    %c0_13 = arith.constant 0 : index
    %c0_14 = arith.constant 0 : index
    %15 = vector.load %arg4[%c3, %c0_13, %c0_14] : memref<4x16x8xbf16, #tpu.memory_space<vmem>>, vector<1x16x8xbf16>
    %16 = vector.shape_cast %15 : vector<1x16x8xbf16> to vector<16x8xbf16>
    %cst_15 = arith.constant dense<0.000000e+00> : vector<144x8xf32>
    %17 = tpu.matmul %4, %16, %cst_15 {dimension_numbers = #tpu.dot_dimension_numbers<[1], [0], [0], [1], [0, 0, 1, 1], [], []>} : vector<144x16xbf16>, vector<16x8xbf16>, vector<144x8xf32> -> vector<144x8xf32>
    %18 = arith.addf %14, %17 : vector<144x8xf32>
    %19 = vector.extract_strided_slice %18 {offsets = [1, 0], sizes = [143, 8], strides = [1, 1]} : vector<144x8xf32> to vector<143x8xf32>
    %20 = vector.extract_strided_slice %18 {offsets = [0, 0], sizes = [1, 8], strides = [1, 1]} : vector<144x8xf32> to vector<1x8xf32>
    %21 = tpu.concatenate %19, %20 in 0 : vector<143x8xf32>, vector<1x8xf32> -> vector<144x8xf32>
    %22 = arith.addf %11, %21 : vector<144x8xf32>
    %c1_i32 = arith.constant 1 : i32
    %23 = arith.muli %arg0, %c1_i32 : i32
    %24 = arith.addi %23, %arg1 : i32
    %c144_i32 = arith.constant 144 : i32
    %25 = arith.muli %24, %c144_i32 : i32
    %26 = tpu.iota {dimensions = array<i32: 0>} : vector<144x1xi32>
    %27 = vector.broadcast %25 : i32 to vector<144x1xi32>
    %28 = arith.addi %27, %26 : vector<144x1xi32>
    %c144_i32_16 = arith.constant 144 : i32
    %29 = vector.broadcast %c144_i32_16 : i32 to vector<144x1xi32>
    %30 = arith.cmpi slt, %28, %29 : vector<144x1xi32>
    %c9_i32 = arith.constant 9 : i32
    %c0_i32_17 = arith.constant 0 : i32
    %31 = arith.cmpi eq, %c9_i32, %c0_i32_17 : i32
    %c1_i32_18 = arith.constant 1 : i32
    %32 = arith.select %31, %c1_i32_18, %c9_i32 : i32
    %33 = vector.broadcast %32 : i32 to vector<144x1xi32>
    %34 = arith.remsi %28, %33 : vector<144x1xi32>
    %c0_i32_19 = arith.constant 0 : i32
    %35 = vector.broadcast %c0_i32_19 : i32 to vector<144x1xi32>
    %36 = arith.cmpi ne, %34, %35 : vector<144x1xi32>
    %c0_i32_20 = arith.constant 0 : i32
    %37 = vector.broadcast %c0_i32_20 : i32 to vector<144x1xi32>
    %38 = arith.cmpi slt, %34, %37 : vector<144x1xi32>
    %c0_i32_21 = arith.constant 0 : i32
    %39 = arith.cmpi slt, %32, %c0_i32_21 : i32
    %40 = vector.broadcast %39 : i1 to vector<144x1xi1>
    %41 = vector.broadcast %40 : vector<144x1xi1> to vector<144x1xi1>
    %42 = arith.xori %38, %41 : vector<144x1xi1>
    %43 = arith.andi %42, %36 : vector<144x1xi1>
    %44 = vector.broadcast %32 : i32 to vector<144x1xi32>
    %45 = arith.addi %34, %44 : vector<144x1xi32>
    %46 = arith.select %43, %45, %34 : vector<144x1xi1>, vector<144x1xi32>
    %c8_i32 = arith.constant 8 : i32
    %47 = vector.broadcast %c8_i32 : i32 to vector<144x1xi32>
    %48 = arith.cmpi ne, %46, %47 : vector<144x1xi32>
    %49 = arith.andi %30, %48 : vector<144x1xi1>
    %cst_22 = arith.constant 0.000000e+00 : f32
    %50 = vector.shape_cast %49 : vector<144x1xi1> to vector<144x1xi1>
    %51 = vector.broadcast %50 : vector<144x1xi1> to vector<144x8xi1>
    %52 = vector.broadcast %cst_22 : f32 to vector<144x8xf32>
    %53 = arith.select %51, %22, %52 : vector<144x8xi1>, vector<144x8xf32>
    %cst_23 = arith.constant dense<0.000000e+00> : vector<8xf32>
    %54 = vector.multi_reduction <add>, %53, %cst_23 [0] : vector<144x8xf32> to vector<8xf32>
    %55 = vector.shape_cast %54 : vector<8xf32> to vector<1x8xf32>
    %56 = arith.mulf %53, %53 : vector<144x8xf32>
    %cst_24 = arith.constant dense<0.000000e+00> : vector<8xf32>
    %57 = vector.multi_reduction <add>, %56, %cst_24 [0] : vector<144x8xf32> to vector<8xf32>
    %58 = vector.shape_cast %57 : vector<8xf32> to vector<1x8xf32>
    %59 = tpu.concatenate %55, %58 in 0 : vector<1x8xf32>, vector<1x8xf32> -> vector<2x8xf32>
    %c0_25 = arith.constant 0 : index
    %c0_26 = arith.constant 0 : index
    %60 = vector.load %arg6[%c0_25, %c0_26] : memref<8x8xf32, #tpu.memory_space<vmem>>, vector<2x8xf32>
    %61 = arith.addf %60, %59 : vector<2x8xf32>
    %c0_27 = arith.constant 0 : index
    %c0_28 = arith.constant 0 : index
    %62 = vector.load %arg6[%c0_27, %c0_28] : memref<8x8xf32, #tpu.memory_space<vmem>>, vector<2x8xf32>
    tpu.vector_store %arg6[%c0_27, %c0_28], %61 {strides = array<i32>} : memref<8x8xf32, #tpu.memory_space<vmem>>, vector<2x8xf32>,
    %c0_i32_29 = arith.constant 0 : i32
    %63 = arith.cmpi eq, %arg1, %c0_i32_29 : i32
    %64 = arith.extui %63 : i1 to i32
    %c0_i32_30 = arith.constant 0 : i32
    %65 = arith.cmpi ne, %64, %c0_i32_30 : i32
    scf.if %65 {
      %c0_31 = arith.constant 0 : index
      %c0_32 = arith.constant 0 : index
      %66 = vector.load %arg6[%c0_31, %c0_32] : memref<8x8xf32, #tpu.memory_space<vmem>>, vector<8x8xf32>
      %c0_33 = arith.constant 0 : index
      %c0_34 = arith.constant 0 : index
      %67 = vector.load %arg5[%c0_33, %c0_34] : memref<8x8xf32, #tpu.memory_space<vmem>>, vector<8x8xf32>
      tpu.vector_store %arg5[%c0_33, %c0_34], %66 {strides = array<i32>} : memref<8x8xf32, #tpu.memory_space<vmem>>, vector<8x8xf32>,
    } else {
    }
    return
  }
  func.func @transform_0(%arg0: i32, %arg1: i32) -> (i32, i32) {
    %c1_i32 = arith.constant 1 : i32
    %0 = arith.muli %arg0, %c1_i32 : i32
    %1 = arith.addi %0, %arg1 : i32
    %c0_i32 = arith.constant 0 : i32
    %c0_i32_0 = arith.constant 0 : i32
    return %1, %c0_i32 : i32, i32
  }
  func.func @transform_1(%arg0: i32, %arg1: i32) -> (i32, i32) {
    %c1_i32 = arith.constant 1 : i32
    %0 = arith.muli %arg0, %c1_i32 : i32
    %1 = arith.addi %0, %arg1 : i32
    %c0_i32 = arith.constant 0 : i32
    %c0_i32_0 = arith.constant 0 : i32
    return %1, %c0_i32 : i32, i32
  }
  func.func @transform_2(%arg0: i32, %arg1: i32) -> (i32, i32, i32) {
    %c0_i32 = arith.constant 0 : i32
    %c0_i32_0 = arith.constant 0 : i32
    %c0_i32_1 = arith.constant 0 : i32
    %c0_i32_2 = arith.constant 0 : i32
    return %c0_i32, %c0_i32_0, %c0_i32_1 : i32, i32, i32
  }
  func.func @transform_3(%arg0: i32, %arg1: i32) -> (i32, i32) {
    %c0_i32 = arith.constant 0 : i32
    %c0_i32_0 = arith.constant 0 : i32
    return %arg0, %c0_i32 : i32, i32
  }
}

</mosaic_0001>

<bundles_post_ra>
// kernel: tpu_custom_call.1
= control target key start
LH: loop header
LB: loop body
LE: loop exit
PB: predicated region body
PF: predicated region fallthrough
CT: control target
= control target key end

     0   :  { %v1745_v1 = vmov 0.0   ;;  %vm1746_vm0 = vmmov 0   ;;  %vm158_vm1 = vcmask 130048   ;;  %s2641_s0 = inlined_call_operand.vmem [shape: bf16[144,16], index: 0, kind: input, shape index: {}]   ;;  %s2642_s1 = inlined_call_operand.vmem [shape: bf16[144,16], index: 1, kind: input, shape index: {}]   ;;  %s2643_s2 = inlined_call_operand.vmem [shape: bf16[4,16,8], index: 2, kind: input, shape index: {}]   ;;  %s2644_s3 = inlined_call_operand.hbm [shape: f32[8,8], index: 3, kind: output, shape index: {}]  }
   0x1   :  { %v1699_v0 = vld [vmem:[%s2643_s2 + $0x10] sm:$0xff]   ;;  %1472 = vmatprep.subr.bf16.mxu1 %v1745_v1  ;;  %1548 = vmatprep.subr.bf16.mxu0 %v1745_v1  ;;  %v1700_v2 = vld [vmem:[%s2643_s2 + $0x18] sm:$0xff]   ;;  %v1701_v3 = vld [vmem:[%s2642_s1] sm:$0xff]  }
   0x2   :  { %1473 = vmatpush3.bf16.msra.mxu1 %v1699_v0  ;;  %1474 = vmatprep.mubr.msk.bf16.mxu1 %vm1746_vm0, %v1745_v1  ;;  %v1702_v4 = vld [vmem:[%s2643_s2 + $0x8] sm:$0xff]   ;;  %v1703_v5 = vld [vmem:[%s2643_s2] sm:$0xff]   ;;  %v1705_v7 = vld [vmem:[%s2642_s1 + $0x10] sm:$0xff]  }
   0x3   :  { %1549 = vmatpush3.bf16.msra.mxu0 %v1700_v2  ;;  %1550 = vmatprep.mubr.msk.bf16.mxu0 %vm1746_vm0, %v1745_v1  ;;  %v1704_v6 = vld [vmem:[%s2642_s1 + $0x8] sm:$0xff]  }
   0x4   :  { %1586 = vmatprep.subr.bf16.mxu0 %v1745_v1  ;;  %1510 = vmatprep.subr.bf16.mxu1 %v1745_v1 }
   0x5   :  { %1475 = vmatmul.mubr.msk.bf16.vlgmr.msra.gmra.mrb[0].mxu1 %vm158_vm1, %v1701_v3 }
   0x6   :  { %1551 = vmatmul.mubr.msk.bf16.vlgmr.msra.gmra.mrb[0].mxu0 %vm158_vm1, %v1701_v3  ;;  %1511 = vmatpush3.bf16.msra.mxu1 %v1703_v5 }
   0x7   :  { %1587 = vmatpush3.bf16.msra.mxu0 %v1702_v4  ;;  %1478 = vmatprep.mubr.msk.bf16.mxu1 %vm1746_vm0, %v1745_v1 }
   0x8   :  { %1554 = vmatprep.mubr.msk.bf16.mxu0 %vm1746_vm0, %v1745_v1 }
   0xd   :  { %1479 = vmatmul.mubr.msk.bf16.gmra.mrb[4].mxu1 %vm158_vm1, %v1704_v6 }
   0xe   :  { %1555 = vmatmul.mubr.msk.bf16.gmra.mrb[4].mxu0 %vm158_vm1, %v1704_v6  ;;  %1482 = vmatprep.mubr.msk.bf16.mxu1 %vm1746_vm0, %v1745_v1 }
   0xf   :  { %1558 = vmatprep.mubr.msk.bf16.mxu0 %vm1746_vm0, %v1745_v1 }
  0x15   :  { %1483 = vmatmul.mubr.msk.bf16.gmra.mrb[8].mxu1 %vm158_vm1, %v1705_v7 }
  0x16   :  { %1559 = vmatmul.mubr.msk.bf16.gmra.mrb[8].mxu0 %vm158_vm1, %v1705_v7  ;;  %1486 = vmatprep.mubr.msk.bf16.mxu1 %vm1746_vm0, %v1745_v1 }
  0x17   :  { %8 = vsyncpa [#allocation4], 0  ;;  %1562 = vmatprep.mubr.msk.bf16.mxu0 %vm1746_vm0, %v1745_v1  ;;  %v1706_v8 = vld [vmem:[%s2642_s1 + $0x18] sm:$0xff]   ;;  %v1707_v9 = vld [vmem:[%s2642_s1 + $0x20] sm:$0xff]   ;;  %vm64_vm2 = vcmask 64512   ;;  %v796_v41 = vlaneseq  ;;  %vm720_vm12 = vcmask 1046528  }
  0x18   :  { %v1708_v10 = vld [vmem:[%s2642_s1 + $0x28] sm:$0xff]   ;;  %v1709_v11 = vld [vmem:[%s2642_s1 + $0x30] sm:$0xff]   ;;  %v1710_v12 = vld [vmem:[%s2642_s1 + $0x38] sm:$0xff]   ;;  %65 = vst.msk [vmem:[#allocation2] sm:$0xff] %vm64_vm2, %v1745_v1 }
  0x19   :  { %v1711_v13 = vld [vmem:[%s2642_s1 + $0x40] sm:$0xff]   ;;  %v1713_v15 = vld [vmem:[%s2641_s0 + $0x8] sm:$0xff]   ;;  %v1714_v16 = vld [vmem:[%s2641_s0 + $0x10] sm:$0xff]   ;;  %v1968_v44 = vshrl.u32 %v796_v41, 7 }
  0x1a   :  { %v1712_v14 = vld [vmem:[%s2641_s0] sm:$0xff]   ;;  %v1715_v17 = vld [vmem:[%s2641_s0 + $0x18] sm:$0xff]   ;;  %v1717_v19 = vld [vmem:[%s2641_s0 + $0x28] sm:$0xff]  }
  0x1b   :  { %v1716_v18 = vld [vmem:[%s2641_s0 + $0x20] sm:$0xff]   ;;  %v1718_v20 = vld [vmem:[%s2641_s0 + $0x30] sm:$0xff]   ;;  %v1719_v21 = vld [vmem:[%s2641_s0 + $0x38] sm:$0xff]   ;;  %v798_v45 = vadd.s32 8, %v1968_v44  ;;  %v799_v47 = vadd.s32 16, %v1968_v44  ;;  %v1989_v58 = vadd.s32 24, %v1968_v44 }
  0x1c   :  { %v1720_v22 = vld [vmem:[%s2641_s0 + $0x40] sm:$0xff]   ;;  %v1977_v50 = vmul.u32.u64.low 3817748708, %v1968_v44  ;;  %v1978_v51 = vmul.u32.u64.high 3817748708, %v1968_v44, %v1977_v50  ;;  %v1992_v60 = vadd.s32 32, %v1968_v44  ;;  %v2007_v5 = vadd.s32 48, %v1968_v44  ;;  %s1747_s0 = smov [#allocation3]  }
  0x1d   :  { %1487 = vmatmul.mubr.msk.bf16.gmra.mrb[12].mxu1 %vm158_vm1, %v1706_v8  ;;  %v1980_v53 = vmul.u32.u64.low 3817748708, %v798_v45  ;;  %v1981_v54 = vmul.u32.u64.high 3817748708, %v798_v45, %v1980_v53  ;;  %v1983_v55 = vmul.u32.u64.low 3817748708, %v799_v47  ;;  %v1984_v56 = vmul.u32.u64.high 3817748708, %v799_v47, %v1983_v55  ;;  %s1348_s26 = sshll.u32 %s1747_s0, 4  ;;  %s1349_s26 = int_to_ptr.vmem [resolvable:$true] %s1348_s26 }
  0x1e   :  { %1563 = vmatmul.mubr.msk.bf16.gmra.mrb[12].mxu0 %vm158_vm1, %v1706_v8  ;;  %1490 = vmatprep.mubr.msk.bf16.mxu1 %vm1746_vm0, %v1745_v1  ;;  %v858_v62 = vshrl.u32 %v1978_v51, 3  ;;  %v2003_v3 = vmul.u32.u64.low 3817748708, %v1989_v58  ;;  %v2004_v4 = vmul.u32.u64.high 3817748708, %v1989_v58, %v2003_v3  ;;  %v2014_v8 = vadd.s32 56, %v1968_v44  ;;  %s1721_s27 = scalar_lea.vmem %s1349_s26, 128  ;;  %p1726_p1 = scmp.lt.s32.totalorder %s1349_s26, %s1349_s26 }
  0x1f   :  { %1566 = vmatprep.mubr.msk.bf16.mxu0 %vm1746_vm0, %v1745_v1  ;;  %v869_v0 = vshrl.u32 %v1981_v54, 3  ;;  %v880_v2 = vshrl.u32 %v1984_v56, 3  ;;  %v2010_v6 = vmul.u32.u64.low 3817748708, %v1992_v60  ;;  %v2011_v7 = vmul.u32.u64.high 3817748708, %v1992_v60, %v2010_v6  ;;  %p1722_p0 = scmp.ne.s32.totalorder %s1349_s26, %s1721_s27  ;;  %p1727_p2 = scmp.lt.s32.totalorder %s1721_s27, %s1721_s27 }
  0x20   :  { %v2069_v56 = vadd.s32 80, %v1968_v44 }
  0x21   :  { %p1728_p3 = por %p1727_p2, %p1726_p1 }
  0x23   :  { %p1729_p4 = pnand %p1728_p3, %p1722_p0 }
  0x25   :  { %1491 = vmatmul.mubr.msk.bf16.gmra.mrb[16].mxu1 %vm158_vm1, %v1707_v9 }
  0x26   :  { %1567 = vmatmul.mubr.msk.bf16.gmra.mrb[16].mxu0 %vm158_vm1, %v1707_v9  ;;  %1494 = vmatprep.mubr.msk.bf16.mxu1 %vm1746_vm0, %v1745_v1  ;;  %v859_v9 = vmul.u32 9, %v858_v62 }
  0x27   :  { %1570 = vmatprep.mubr.msk.bf16.mxu0 %vm1746_vm0, %v1745_v1 }
  0x2d   :  { %1495 = vmatmul.mubr.msk.bf16.gmra.mrb[20].mxu1 %vm158_vm1, %v1708_v10 }
  0x2e   :  { %1571 = vmatmul.mubr.msk.bf16.gmra.mrb[20].mxu0 %vm158_vm1, %v1708_v10  ;;  %1498 = vmatprep.mubr.msk.bf16.mxu1 %vm1746_vm0, %v1745_v1  ;;  %v870_v10 = vmul.u32 9, %v869_v0 }
  0x2f   :  { %1574 = vmatprep.mubr.msk.bf16.mxu0 %vm1746_vm0, %v1745_v1 }
  0x35   :  { %1499 = vmatmul.mubr.msk.bf16.gmra.mrb[24].mxu1 %vm158_vm1, %v1709_v11 }
  0x36   :  { %1575 = vmatmul.mubr.msk.bf16.gmra.mrb[24].mxu0 %vm158_vm1, %v1709_v11  ;;  %1502 = vmatprep.mubr.msk.bf16.mxu1 %vm1746_vm0, %v1745_v1 }
  0x37   :  { %1578 = vmatprep.mubr.msk.bf16.mxu0 %vm1746_vm0, %v1745_v1 }
  0x3d   :  { %1503 = vmatmul.mubr.msk.bf16.gmra.mrb[28].mxu1 %vm158_vm1, %v1710_v12 }
  0x3e   :  { %1579 = vmatmul.mubr.msk.bf16.gmra.mrb[28].mxu0 %vm158_vm1, %v1710_v12  ;;  %1506 = vmatprep.mubr.msk.bf16.mxu1 %vm1746_vm0, %v1745_v1 }
  0x3f   :  { %1582 = vmatprep.mubr.msk.bf16.mxu0 %vm1746_vm0, %v1745_v1 }
  0x45   :  { %1507 = vmatmul.mubr.msk.bf16.gmra.mrb[32].mxu1 %vm158_vm1, %v1711_v13 }
  0x46   :  { %1583 = vmatmul.mubr.msk.bf16.gmra.mrb[32].mxu0 %vm158_vm1, %v1711_v13  ;;  %1512 = vmatprep.mubr.msk.bf16.mxu1 %vm1746_vm0, %v1745_v1  ;;  %v2021_v13 = vadd.s32 64, %v1968_v44 }
  0x47   :  { %1588 = vmatprep.mubr.msk.bf16.mxu0 %vm1746_vm0, %v1745_v1 }
  0x4d   :  { %1513 = vmatmul.mubr.msk.bf16.vlgmr.msra.gmra.mrb[36].mxu1 %vm158_vm1, %v1712_v14 }
  0x4e   :  { %1589 = vmatmul.mubr.msk.bf16.vlgmr.msra.gmra.mrb[0].mxu0 %vm158_vm1, %v1712_v14  ;;  %1516 = vmatprep.mubr.msk.bf16.mxu1 %vm1746_vm0, %v1745_v1 }
  0x4f   :  { %1592 = vmatprep.mubr.msk.bf16.mxu0 %vm1746_vm0, %v1745_v1 }
  0x55   :  { %1517 = vmatmul.mubr.msk.bf16.gmra.mrb[40].mxu1 %vm158_vm1, %v1713_v15 }
  0x56   :  { %1593 = vmatmul.mubr.msk.bf16.gmra.mrb[4].mxu0 %vm158_vm1, %v1713_v15  ;;  %1520 = vmatprep.mubr.msk.bf16.mxu1 %vm1746_vm0, %v1745_v1  ;;  %v881_v15 = vmul.u32 9, %v880_v2 }
  0x57   :  { %1596 = vmatprep.mubr.msk.bf16.mxu0 %vm1746_vm0, %v1745_v1 }
  0x5d   :  { %1521 = vmatmul.mubr.msk.bf16.gmra.mrb[44].mxu1 %vm158_vm1, %v1714_v16 }
  0x5e   :  { %1597 = vmatmul.mubr.msk.bf16.gmra.mrb[8].mxu0 %vm158_vm1, %v1714_v16  ;;  %1524 = vmatprep.mubr.msk.bf16.mxu1 %vm1746_vm0, %v1745_v1 }
  0x5f   :  { %1600 = vmatprep.mubr.msk.bf16.mxu0 %vm1746_vm0, %v1745_v1 }
  0x65   :  { %1525 = vmatmul.mubr.msk.bf16.gmra.mrb[48].mxu1 %vm158_vm1, %v1715_v17 }
  0x66   :  { %1601 = vmatmul.mubr.msk.bf16.gmra.mrb[12].mxu0 %vm158_vm1, %v1715_v17  ;;  %1528 = vmatprep.mubr.msk.bf16.mxu1 %vm1746_vm0, %v1745_v1  ;;  %v2026_v16 = vmul.u32.u64.low 3817748708, %v2007_v5  ;;  %v2027_v17 = vmul.u32.u64.high 3817748708, %v2007_v5, %v2026_v16 }
  0x67   :  { %1604 = vmatprep.mubr.msk.bf16.mxu0 %vm1746_vm0, %v1745_v1  ;;  %v2107_v16 = vadd.s32 88, %v1968_v44 }
  0x6d   :  { %1529 = vmatmul.mubr.msk.bf16.gmra.mrb[52].mxu1 %vm158_vm1, %v1716_v18 }
  0x6e   :  { %1605 = vmatmul.mubr.msk.bf16.gmra.mrb[16].mxu0 %vm158_vm1, %v1716_v18  ;;  %1532 = vmatprep.mubr.msk.bf16.mxu1 %vm1746_vm0, %v1745_v1 }
  0x6f   :  { %1608 = vmatprep.mubr.msk.bf16.mxu0 %vm1746_vm0, %v1745_v1 }
  0x75   :  { %1533 = vmatmul.mubr.msk.bf16.gmra.mrb[56].mxu1 %vm158_vm1, %v1717_v19 }
  0x76   :  { %1609 = vmatmul.mubr.msk.bf16.gmra.mrb[20].mxu0 %vm158_vm1, %v1717_v19  ;;  %1536 = vmatprep.mubr.msk.bf16.mxu1 %vm1746_vm0, %v1745_v1 }
  0x77   :  { %1612 = vmatprep.mubr.msk.bf16.mxu0 %vm1746_vm0, %v1745_v1 }
  0x7d   :  { %1537 = vmatmul.mubr.msk.bf16.gmra.mrb[60].mxu1 %vm158_vm1, %v1718_v20 }
  0x7e   :  { %1613 = vmatmul.mubr.msk.bf16.gmra.mrb[24].mxu0 %vm158_vm1, %v1718_v20  ;;  %1540 = vmatprep.mubr.msk.bf16.mxu1 %vm1746_vm0, %v1745_v1  ;;  %v2030_v19 = vmul.u32.u64.low 3817748708, %v2014_v8  ;;  %v2031_v20 = vmul.u32.u64.high 3817748708, %v2014_v8, %v2030_v19 }
  0x7f   :  { %1616 = vmatprep.mubr.msk.bf16.mxu0 %vm1746_vm0, %v1745_v1 }
  0x85   :  { %1541 = vmatmul.mubr.msk.bf16.gmra.mrb[64].mxu1 %vm158_vm1, %v1719_v21 }
  0x86   :  { %1617 = vmatmul.mubr.msk.bf16.gmra.mrb[28].mxu0 %vm158_vm1, %v1719_v21  ;;  %1544 = vmatprep.mubr.msk.bf16.mxu1 %vm1746_vm0, %v1745_v1 }
  0x87   :  { %1620 = vmatprep.mubr.msk.bf16.mxu0 %vm1746_vm0, %v1745_v1  ;;  %v1999_v1 = vadd.s32 40, %v1968_v44 }
  0x89   :  { %v2017_v11 = vmul.u32.u64.low 3817748708, %v1999_v1  ;;  %v2018_v12 = vmul.u32.u64.high 3817748708, %v1999_v1, %v2017_v11 }
  0x8b   :  { %v913_v41 = vshrl.u32 %v2018_v12, 3 }
  0x8d   :  { %1545 = vmatmul.mubr.msk.bf16.gmra.mrb[68].mxu1 %vm158_vm1, %v1720_v22  ;;  %v914_v2 = vmul.u32 9, %v913_v41 }
  0x8e   :  { %1621 = vmatmul.mubr.msk.bf16.gmra.mrb[32].mxu0 %vm158_vm1, %v1720_v22  ;;  %v860_v22 = vsub.s32 %v1968_v44, %v859_v9 }
  0x90   :  { %vm1050_vm3 = vcmp.ne.s32.totalorder %v860_v22, 0  ;;  %vm1068_vm4 = vcmp.lt.s32.totalorder %v860_v22, 0 }
  0x91   :  { %vm2057_vm9 = vmand %vm1068_vm4, %vm1050_vm3 }
  0xd8   :  { %v1948_v23 = vpop.f32.mrb[0].mxu1 }
  0xd9   :  { %v1476_v24 = vpop.f32.mrb[1].mxu1 }
  0xda   :  { %v1950_v25 = vpop.f32.mrb[2].mxu1 }
  0xdb   :  { %v1477_v26 = vpop.f32.mrb[3].mxu1 }
  0xdc   :  { %v2036_v26 = vsub.s32 %v798_v45, %v870_v10 }
  0xde   :  { %vm1051_vm5 = vcmp.ne.s32.totalorder %v2036_v26, 0  ;;  %vm1069_vm6 = vcmp.lt.s32.totalorder %v2036_v26, 0 }
  0xdf   :  { %vm2075_vm10 = vmand %vm1069_vm6, %vm1051_vm5 }
  0xe0   :  { %v1952_v27 = vpop.f32.mrb[4].mxu1 }
  0xe1   :  { %v1480_v28 = vpop.f32.mrb[5].mxu1 }
  0xe2   :  { %v1954_v29 = vpop.f32.mrb[6].mxu1 }
  0xe3   :  { %v1481_v30 = vpop.f32.mrb[7].mxu1 }
  0xe4   :  { %v2039_v28 = vmul.u32.u64.low 3817748708, %v2021_v13  ;;  %v2040_v30 = vmul.u32.u64.high 3817748708, %v2021_v13, %v2039_v28 }
  0xe6   :  { %v946_v3 = vshrl.u32 %v2040_v30, 3 }
  0xe8   :  { %v1956_v31 = vpop.f32.mrb[8].mxu1  ;;  %v947_v19 = vmul.u32 9, %v946_v3 }
  0xe9   :  { %v1484_v32 = vpop.f32.mrb[9].mxu1 }
  0xea   :  { %v1958_v33 = vpop.f32.mrb[10].mxu1  ;;  %v2042_v32 = vsub.s32 %v799_v47, %v881_v15  ;;  %v924_v47 = vshrl.u32 %v2027_v17, 3  ;;  %v2103_v12 = vmul.u32.u64.low 3817748708, %v2069_v56  ;;  %v2104_v15 = vmul.u32.u64.high 3817748708, %v2069_v56, %v2103_v12 }
  0xeb   :  { %v1485_v34 = vpop.f32.mrb[11].mxu1 }
  0xec   :  { %v891_v34 = vshrl.u32 %v2004_v4, 3  ;;  %vm1052_vm7 = vcmp.ne.s32.totalorder %v2042_v32, 0  ;;  %vm1070_vm8 = vcmp.lt.s32.totalorder %v2042_v32, 0  ;;  %v2083_v0 = vadd.s32 9, %v2042_v32 }
  0xed   :  { %vm2092_vm11 = vmand %vm1070_vm8, %vm1052_vm7  ;;  %v925_v9 = vmul.u32 9, %v924_v47 }
  0xee   :  { %v892_v45 = vmul.u32 9, %v891_v34 }
  0xf0   :  { %v1960_v35 = vpop.f32.mrb[12].mxu1 }
  0xf1   :  { %v1488_v36 = vpop.f32.mrb[13].mxu1 }
  0xf2   :  { %v1962_v37 = vpop.f32.mrb[14].mxu1  ;;  %v902_v36 = vshrl.u32 %v2011_v7, 3  ;;  %v2097_v7 = vsub.s32 %v1989_v58, %v892_v45 }
  0xf3   :  { %v1489_v38 = vpop.f32.mrb[15].mxu1 }
  0xf4   :  { %v2047_v38 = vadd.s32 72, %v1968_v44  ;;  %v903_v51 = vmul.u32 9, %v902_v36  ;;  %vm1053_vm14 = vcmp.ne.s32.totalorder %v2097_v7, 0  ;;  %vm1071_vm15 = vcmp.lt.s32.totalorder %v2097_v7, 0 }
  0xf5   :  { %vm2161_vm6 = vmand %vm1071_vm15, %vm1053_vm14 }
  0xf6   :  { %v2063_v53 = vmul.u32.u64.low 3817748708, %v2047_v38  ;;  %v2064_v54 = vmul.u32.u64.high 3817748708, %v2047_v38, %v2063_v53  ;;  %v2100_v10 = vsub.s32 %v1992_v60, %v903_v51  ;;  %v1124_v60 = vsel %vm2092_vm11, %v2083_v0, %v2042_v32 }
  0xf8   :  { %v1964_v39 = vpop.f32.mrb[16].mxu1  ;;  %vm1054_vm0 = vcmp.ne.s32.totalorder %v2100_v10, 0  ;;  %v957_v32 = vshrl.u32 %v2064_v54, 3  ;;  %vm1072_vm1 = vcmp.lt.s32.totalorder %v2100_v10, 0 }
  0xf9   :  { %v1492_v40 = vpop.f32.mrb[17].mxu1 }
  0xfa   :  { %v1966_v42 = vpop.f32.mrb[18].mxu1  ;;  %v1104_v40 = vadd.s32 9, %v860_v22 }
  0xfb   :  { %v1493_v43 = vpop.f32.mrb[19].mxu1 }
  0xfc   :  { %v1122_v4 = vsel %vm2057_vm9, %v1104_v40, %v860_v22  ;;  %v2127_v22 = vadd.s32 9, %v2097_v7 }
  0xfd   :  { %vm2109_vm13 = vcmp.ne.s32.totalorder %v1122_v4, 8 }
 0x100   :  { %v1971_v46 = vpop.f32.mrb[20].mxu1 }
 0x101   :  { %v1496_v48 = vpop.f32.mrb[21].mxu1 }
 0x102   :  { %v1974_v49 = vpop.f32.mrb[22].mxu1 }
 0x103   :  { %v1497_v52 = vpop.f32.mrb[23].mxu1 }
 0x104   :  { %v935_v52 = vshrl.u32 %v2031_v20, 3 }
 0x106   :  { %v936_v11 = vmul.u32 9, %v935_v52 }
 0x108   :  { %v1986_v57 = vpop.f32.mrb[24].mxu1 }
 0x109   :  { %v1500_v59 = vpop.f32.mrb[25].mxu1 }
 0x10a   :  { %v1994_v61 = vpop.f32.mrb[26].mxu1 }
 0x10b   :  { %v1501_v63 = vpop.f32.mrb[27].mxu1 }
 0x10c   :  { %v2080_v63 = vadd.s32 9, %v2036_v26 }
 0x10e   :  { %v1123_v58 = vsel %vm2075_vm10, %v2080_v63, %v2036_v26  ;;  %vm2175_vm10 = vmand %vm1072_vm1, %vm1054_vm0  ;;  %vm2199_vm1 = vcmp.ne.s32.totalorder %v1124_v60, 8 }
 0x10f   :  { %vm2195_vm0 = vcmp.ne.s32.totalorder %v1123_v58, 8 }
 0x110   :  { %v2023_v14 = vpop.f32.mrb[28].mxu1 }
 0x111   :  { %v1504_v18 = vpop.f32.mrb[29].mxu1 }
 0x112   :  { %v2033_v21 = vpop.f32.mrb[30].mxu1  ;;  %v2122_v18 = vsub.s32 %v1999_v1, %v914_v2  ;;  %v2137_v1 = vsub.s32 %v2014_v8, %v936_v11  ;;  %v1108_v8 = vadd.s32 9, %v2100_v10 }
 0x113   :  { %v1505_v24 = vpop.f32.mrb[31].mxu1 }
 0x114   :  { %v2130_v24 = vsub.s32 %v2007_v5, %v925_v9  ;;  %v2142_v40 = vmul.u32.u64.low 3817748708, %v2107_v16  ;;  %v2143_v5 = vmul.u32.u64.high 3817748708, %v2107_v16, %v2142_v40  ;;  %vm1055_vm3 = vcmp.ne.s32.totalorder %v2122_v18, 0 }
 0x115   :  { %vm1073_vm4 = vcmp.lt.s32.totalorder %v2122_v18, 0  ;;  %vm1057_vm8 = vcmp.ne.s32.totalorder %v2137_v1, 0  ;;  %vm1075_vm9 = vcmp.lt.s32.totalorder %v2137_v1, 0  ;;  %v2191_v3 = vadd.s32 9, %v2122_v18 }
 0x116   :  { %vm1056_vm5 = vcmp.ne.s32.totalorder %v2130_v24, 0  ;;  %vm1074_vm7 = vcmp.lt.s32.totalorder %v2130_v24, 0  ;;  %vm2186_vm11 = vmand %vm1073_vm4, %vm1055_vm3  ;;  %v2212_v12 = vadd.s32 9, %v2130_v24  ;;  %v1126_v17 = vsel %vm2175_vm10, %v1108_v8, %v2100_v10 }
 0x117   :  { %vm2207_vm3 = vmand %vm1074_vm7, %vm1056_vm5 }
 0x118   :  { %v2052_v43 = vpop.f32.mrb[32].mxu1  ;;  %vm2226_vm4 = vmand %vm1075_vm9, %vm1057_vm8  ;;  %v1128_v10 = vsel %vm2207_vm3, %v2212_v12, %v2130_v24 }
 0x119   :  { %v1508_v48 = vpop.f32.mrb[33].mxu1 }
 0x11a   :  { %v2066_v55 = vpop.f32.mrb[34].mxu1  ;;  %v2152_v48 = vsub.s32 %v2021_v13, %v947_v19  ;;  %v958_v13 = vmul.u32 9, %v957_v32 }
 0x11b   :  { %v1509_v59 = vpop.f32.mrb[35].mxu1 }
 0x11c   :  { %v968_v59 = vshrl.u32 %v2104_v15, 3  ;;  %vm1058_vm14 = vcmp.ne.s32.totalorder %v2152_v48, 0  ;;  %vm1076_vm15 = vcmp.lt.s32.totalorder %v2152_v48, 0  ;;  %v2215_v15 = vadd.s32 9, %v2137_v1 }
 0x11d   :  { %vm2242_vm5 = vmand %vm1076_vm15, %vm1058_vm14 }
 0x11e   :  { %v969_v40 = vmul.u32 9, %v968_v59 }
 0x120   :  { %v403_v20 = vpop.f32.mrb[36].mxu1 }
 0x121   :  { %v404_v26 = vadd.f32 %v403_v20, %v1948_v23  ;;  %v2133_v28 = vpop.f32.mrb[0].mxu0  ;;  %v1514_v30 = vpop.f32.mrb[37].mxu1  ;;  %v2146_v23 = vadd.s32 96, %v1968_v44  ;;  %v1125_v20 = vsel %vm2161_vm6, %v2127_v22, %v2097_v7  ;;  %vm2279_vm6 = vcmp.ne.s32.totalorder %v1126_v17, 8 }
 0x122   :  { %v1590_v34 = vpop.f32.mrb[1].mxu0  ;;  %v406_v36 = vpop.f32.mrb[38].mxu1  ;;  %v2645_v50 = vrot.slane %v2133_v28, 1  ;;  %v2231_v30 = vadd.s32 9, %v2152_v48 }
 0x123   :  { %v407_v41 = vadd.f32 %v406_v36, %v1950_v25  ;;  %v634_v45 = vpop.f32.mrb[2].mxu0  ;;  %v1515_v47 = vpop.f32.mrb[39].mxu1  ;;  %v2181_v62 = vmul.u32.u64.low 3817748708, %v2146_v23  ;;  %v2182_v63 = vmul.u32.u64.high 3817748708, %v2146_v23, %v2181_v62  ;;  %v1127_v25 = vsel %vm2186_vm11, %v2191_v3, %v2122_v18 }
 0x124   :  { %v722_v51 = vrot.slane %v634_v45, 1  ;;  %v1591_v52 = vpop.f32.mrb[3].mxu0  ;;  %v979_v45 = vshrl.u32 %v2143_v5, 3  ;;  %v1129_v18 = vsel %vm2226_vm4, %v2215_v15, %v2137_v1  ;;  %vm2312_vm9 = vcmp.ne.s32.totalorder %v1127_v25, 8 }
 0x126   :  { %v723_v53 = vsel %vm720_vm12, %v2645_v50, %v722_v51  ;;  %v980_v3 = vmul.u32 9, %v979_v45 }
 0x127   :  { %v776_v0 = vadd.f32 %v723_v53, %v404_v26 }
 0x128   :  { %v411_v4 = vpop.f32.mrb[40].mxu1  ;;  %v2308_v9 = vsub.s32 %v2107_v16, %v980_v3 }
 0x129   :  { %v412_v58 = vadd.f32 %v411_v4, %v1952_v27  ;;  %v639_v60 = vpop.f32.mrb[4].mxu0  ;;  %v1518_v19 = vpop.f32.mrb[41].mxu1  ;;  %v2234_v27 = vsub.s32 %v2047_v38, %v958_v13  ;;  %v1212_v32 = vsel %vm2109_vm13, %v776_v0, 0.0  ;;  %v2256_v13 = vadd.s32 104, %v1968_v44 }
 0x12a   :  { %v724_v34 = vrot.slane %v639_v60, 1  ;;  %v1594_v36 = vpop.f32.mrb[5].mxu0  ;;  %v414_v7 = vpop.f32.mrb[42].mxu1  ;;  %vm2259_vm13 = vcmp.ne.s32.totalorder %v1125_v20, 8  ;;  %v1272_v8 = vmul.f32 %v1212_v32, %v1212_v32  ;;  %v990_v4 = vshrl.u32 %v2182_v63, 3 }
 0x12b   :  { %v415_v38 = vadd.f32 %v414_v7, %v1954_v29  ;;  %v642_v47 = vpop.f32.mrb[6].mxu0  ;;  %v1519_v52 = vpop.f32.mrb[43].mxu1  ;;  %v2276_v62 = vadd.s32 9, %v2234_v27  ;;  %vm1059_vm7 = vcmp.ne.s32.totalorder %v2234_v27, 0  ;;  %vm1077_vm8 = vcmp.lt.s32.totalorder %v2234_v27, 0 }
 0x12c   :  { %v725_v53 = vsel %vm720_vm12, %v722_v51, %v724_v34  ;;  %v726_v59 = vrot.slane %v642_v47, 1  ;;  %v1595_v5 = vpop.f32.mrb[7].mxu0  ;;  %v1130_v51 = vsel %vm2242_vm5, %v2231_v30, %v2152_v48  ;;  %v1231_v36 = vsel %vm64_vm2, %v1212_v32, 0.0 }
 0x12d   :  { %v777_v54 = vadd.f32 %v725_v53, %v407_v41  ;;  %v2286_v41 = vsub.s32 %v2069_v56, %v969_v40  ;;  %v2298_v56 = vadd.s32 112, %v1968_v44  ;;  %v1290_v40 = vsel %vm64_vm2, %v1272_v8, 0.0 }
 0x12e   :  { %v727_v0 = vsel %vm720_vm12, %v724_v34, %v726_v59  ;;  %v2292_v20 = vmul.u32.u64.low 3817748708, %v2256_v13  ;;  %v2293_v34 = vmul.u32.u64.high 3817748708, %v2256_v13, %v2292_v20  ;;  %vm1061_vm14 = vcmp.ne.s32.totalorder %v2308_v9, 0 }
 0x12f   :  { %v1213_v60 = vsel %vm2195_vm0, %v777_v54, 0.0  ;;  %v778_v19 = vadd.f32 %v727_v0, %v412_v58  ;;  %vm1060_vm10 = vcmp.ne.s32.totalorder %v2286_v41, 0  ;;  %vm1078_vm11 = vcmp.lt.s32.totalorder %v2286_v41, 0  ;;  %vm2342_vm0 = vmand %vm1077_vm8, %vm1059_vm7 }
 0x130   :  { %v1232_v7 = vsel %vm64_vm2, %v1213_v60, 0.0  ;;  %v1273_v47 = vmul.f32 %v1213_v60, %v1213_v60  ;;  %v419_v52 = vpop.f32.mrb[44].mxu1  ;;  %v2320_v3 = vadd.s32 9, %v2286_v41  ;;  %vm1079_vm15 = vcmp.lt.s32.totalorder %v2308_v9, 0 }
 0x131   :  { %v1233_v63 = vadd.f32 %v1232_v7, %v1231_v36  ;;  %v1214_v6 = vsel %vm2199_vm1, %v778_v19, 0.0  ;;  %v420_v58 = vadd.f32 %v419_v52, %v1956_v31  ;;  %v647_v45 = vpop.f32.mrb[8].mxu0  ;;  %v1522_v17 = vpop.f32.mrb[45].mxu1  ;;  %vm2355_vm1 = vmand %vm1078_vm11, %vm1060_vm10  ;;  %vm2387_vm7 = vcmp.ne.s32.totalorder %v1129_v18, 8 }
 0x132   :  { %v1291_v53 = vsel %vm64_vm2, %v1273_v47, 0.0  ;;  %v1234_v32 = vsel %vm64_vm2, %v1214_v6, 0.0  ;;  %v1274_v5 = vmul.f32 %v1214_v6, %v1214_v6  ;;  %v728_v54 = vrot.slane %v647_v45, 1  ;;  %v1598_v0 = vpop.f32.mrb[9].mxu0  ;;  %v422_v60 = vpop.f32.mrb[46].mxu1 }
 0x133   :  { %v1292_v20 = vadd.f32 %v1291_v53, %v1290_v40  ;;  %v1235_v50 = vadd.f32 %v1234_v32, %v1233_v63  ;;  %v423_v8 = vadd.f32 %v422_v60, %v1958_v33  ;;  %v650_v36 = vpop.f32.mrb[10].mxu0  ;;  %v1523_v7 = vpop.f32.mrb[47].mxu1  ;;  %v991_v33 = vmul.u32 9, %v990_v4 }
 0x134   :  { %v1293_v31 = vsel %vm64_vm2, %v1274_v5, 0.0  ;;  %v729_v19 = vsel %vm720_vm12, %v726_v59, %v728_v54  ;;  %v730_v47 = vrot.slane %v650_v36, 1  ;;  %v1599_v52 = vpop.f32.mrb[11].mxu0  ;;  %v2333_v5 = vadd.s32 9, %v2308_v9 }
 0x135   :  { %v1294_v40 = vadd.f32 %v1293_v31, %v1292_v20  ;;  %v779_v63 = vadd.f32 %v729_v19, %v415_v38  ;;  %v2323_v59 = vmul.u32.u64.low 3817748708, %v2298_v56  ;;  %v2324_v45 = vmul.u32.u64.high 3817748708, %v2298_v56, %v2323_v59 }
 0x136   :  { %v731_v16 = vsel %vm720_vm12, %v728_v54, %v730_v47  ;;  %v1001_v38 = vshrl.u32 %v2293_v34, 3  ;;  %v2347_v20 = vsub.s32 %v2146_v23, %v991_v33  ;;  %vm2397_vm3 = vcmp.ne.s32.totalorder %v1130_v51, 8 }
 0x137   :  { %v1215_v25 = vsel %vm2259_vm13, %v779_v63, 0.0  ;;  %v780_v17 = vadd.f32 %v731_v16, %v420_v58  ;;  %vm2364_vm13 = vmand %vm1079_vm15, %vm1061_vm14  ;;  %v1131_v1 = vsel %vm2342_vm0, %v2276_v62, %v2234_v27  ;;  %v1132_v11 = vsel %vm2355_vm1, %v2320_v3, %v2286_v41 }
 0x138   :  { %v1236_v53 = vsel %vm64_vm2, %v1215_v25, 0.0  ;;  %v1275_v4 = vmul.f32 %v1215_v25, %v1215_v25  ;;  %v427_v32 = vpop.f32.mrb[48].mxu1  ;;  %v1002_v25 = vmul.u32 9, %v1001_v38  ;;  %v1133_v12 = vsel %vm2364_vm13, %v2333_v5, %v2308_v9 }
 0x139   :  { %v1237_v54 = vadd.f32 %v1236_v53, %v1235_v50  ;;  %v1216_v0 = vsel %vm2279_vm6, %v780_v17, 0.0  ;;  %v428_v29 = vadd.f32 %v427_v32, %v1960_v35  ;;  %v655_v58 = vpop.f32.mrb[12].mxu0  ;;  %v1526_v60 = vpop.f32.mrb[49].mxu1  ;;  %v2371_v32 = vadd.s32 120, %v1968_v44 }
 0x13a   :  { %v1295_v50 = vsel %vm64_vm2, %v1275_v4, 0.0  ;;  %v1238_v2 = vsel %vm64_vm2, %v1216_v0, 0.0  ;;  %v1276_v36 = vmul.f32 %v1216_v0, %v1216_v0  ;;  %v732_v7 = vrot.slane %v655_v58, 1  ;;  %v1602_v35 = vpop.f32.mrb[13].mxu0  ;;  %v430_v31 = vpop.f32.mrb[50].mxu1 }
 0x13b   :  { %v1296_v52 = vadd.f32 %v1295_v50, %v1294_v40  ;;  %v1239_v63 = vadd.f32 %v1238_v2, %v1237_v54  ;;  %v431_v23 = vadd.f32 %v430_v31, %v1962_v37  ;;  %v658_v33 = vpop.f32.mrb[14].mxu0  ;;  %v1527_v16 = vpop.f32.mrb[51].mxu1  ;;  %vm2378_vm6 = vcmp.ne.s32.totalorder %v1128_v10, 8 }
 0x13c   :  { %v1297_v17 = vsel %vm64_vm2, %v1276_v36, 0.0  ;;  %v733_v53 = vsel %vm720_vm12, %v730_v47, %v732_v7  ;;  %v734_v4 = vrot.slane %v658_v33, 1  ;;  %v1603_v40 = vpop.f32.mrb[15].mxu0  ;;  %vm1062_vm4 = vcmp.ne.s32.totalorder %v2347_v20, 0 }
 0x13d   :  { %v1298_v37 = vadd.f32 %v1297_v17, %v1296_v52  ;;  %v781_v54 = vadd.f32 %v733_v53, %v423_v8  ;;  %v2417_v26 = vsub.s32 %v2256_v13, %v1002_v25  ;;  %v1012_v30 = vshrl.u32 %v2324_v45, 3 }
 0x13e   :  { %v735_v8 = vsel %vm720_vm12, %v732_v7, %v734_v4  ;;  %v2422_v18 = vmul.u32.u64.low 3817748708, %v2371_v32  ;;  %v2423_v51 = vmul.u32.u64.high 3817748708, %v2371_v32, %v2422_v18  ;;  %v2429_v13 = vadd.s32 128, %v1968_v44 }
 0x13f   :  { %v1217_v48 = vsel %vm2312_vm9, %v781_v54, 0.0  ;;  %v782_v15 = vadd.f32 %v735_v8, %v428_v29  ;;  %vm2436_vm5 = vcmp.ne.s32.totalorder %v1131_v1, 8  ;;  %v2441_v40 = vadd.s32 136, %v1968_v44 }
 0x140   :  { %v1240_v27 = vsel %vm64_vm2, %v1217_v48, 0.0  ;;  %v1277_v22 = vmul.f32 %v1217_v48, %v1217_v48  ;;  %v435_v10 = vpop.f32.mrb[52].mxu1  ;;  %vm1080_vm8 = vcmp.lt.s32.totalorder %v2347_v20, 0  ;;  %vm1063_vm9 = vcmp.ne.s32.totalorder %v2417_v26, 0 }
 0x141   :  { %v1241_v62 = vadd.f32 %v1240_v27, %v1239_v63  ;;  %v1218_v6 = vsel %vm2378_vm6, %v782_v15, 0.0  ;;  %v436_v38 = vadd.f32 %v435_v10, %v1964_v39  ;;  %v663_v29 = vpop.f32.mrb[16].mxu0  ;;  %v1530_v58 = vpop.f32.mrb[53].mxu1  ;;  %v1013_v39 = vmul.u32 9, %v1012_v30  ;;  %vm2476_vm11 = vmand %vm1080_vm8, %vm1062_vm4 }
 0x142   :  { %v1299_v45 = vsel %vm64_vm2, %v1277_v22, 0.0  ;;  %v1242_v60 = vsel %vm64_vm2, %v1218_v6, 0.0  ;;  %v1278_v34 = vmul.f32 %v1218_v6, %v1218_v6  ;;  %v736_v50 = vrot.slane %v663_v29, 1  ;;  %v1606_v2 = vpop.f32.mrb[17].mxu0  ;;  %v438_v36 = vpop.f32.mrb[54].mxu1 }
 0x143   :  { %v1300_v7 = vadd.f32 %v1299_v45, %v1298_v37  ;;  %v1243_v35 = vadd.f32 %v1242_v60, %v1241_v62  ;;  %v439_v31 = vadd.f32 %v438_v36, %v1966_v42  ;;  %v666_v52 = vpop.f32.mrb[18].mxu0  ;;  %v1531_v63 = vpop.f32.mrb[55].mxu1  ;;  %vm1081_vm10 = vcmp.lt.s32.totalorder %v2417_v26, 0 }
 0x144   :  { %v1301_v33 = vsel %vm64_vm2, %v1278_v34, 0.0  ;;  %v737_v16 = vsel %vm720_vm12, %v734_v4, %v736_v50  ;;  %v738_v25 = vrot.slane %v666_v52, 1  ;;  %v1607_v17 = vpop.f32.mrb[19].mxu0  ;;  %v2450_v4 = vadd.s32 9, %v2347_v20  ;;  %vm2485_vm14 = vmand %vm1081_vm10, %vm1063_vm9 }
 0x145   :  { %v1302_v37 = vadd.f32 %v1301_v33, %v1300_v7  ;;  %v783_v54 = vadd.f32 %v737_v16, %v431_v23  ;;  %v2444_v42 = vmul.u32.u64.low 3817748708, %v2429_v13  ;;  %v2445_v0 = vmul.u32.u64.high 3817748708, %v2429_v13, %v2444_v42 }
 0x146   :  { %v739_v8 = vsel %vm720_vm12, %v736_v50, %v738_v25  ;;  %v2457_v23 = vadd.s32 9, %v2417_v26  ;;  %v2461_v27 = vmul.u32.u64.low 3817748708, %v2441_v40  ;;  %v2462_v22 = vmul.u32.u64.high 3817748708, %v2441_v40, %v2461_v27 }
 0x147   :  { %v1219_v1 = vsel %vm2387_vm7, %v783_v54, 0.0  ;;  %v784_v44 = vadd.f32 %v739_v8, %v436_v38  ;;  %v2468_v38 = vsub.s32 %v2298_v56, %v1013_v39  ;;  %v1023_v52 = vshrl.u32 %v2423_v51, 3 }
 0x148   :  { %v1244_v48 = vsel %vm64_vm2, %v1219_v1, 0.0  ;;  %v1279_v15 = vmul.f32 %v1219_v1, %v1219_v1  ;;  %v443_v30 = vpop.f32.mrb[56].mxu1  ;;  %vm2497_vm15 = vcmp.ne.s32.totalorder %v1132_v11, 8  ;;  %vm2506_vm0 = vcmp.ne.s32.totalorder %v1133_v12, 8 }
 0x149   :  { %v1245_v10 = vadd.f32 %v1244_v48, %v1243_v35  ;;  %v1220_v18 = vsel %vm2397_vm3, %v784_v44, 0.0  ;;  %v444_v47 = vadd.f32 %v443_v30, %v1971_v46  ;;  %v671_v62 = vpop.f32.mrb[20].mxu0  ;;  %v1534_v6 = vpop.f32.mrb[57].mxu1  ;;  %v1034_v19 = vshrl.u32 %v2445_v0, 3 }
 0x14a   :  { %v1303_v29 = vsel %vm64_vm2, %v1279_v15, 0.0  ;;  %v1246_v58 = vsel %vm64_vm2, %v1220_v18, 0.0  ;;  %v1280_v45 = vmul.f32 %v1220_v18, %v1220_v18  ;;  %v740_v60 = vrot.slane %v671_v62, 1  ;;  %v1610_v34 = vpop.f32.mrb[21].mxu0  ;;  %v446_v50 = vpop.f32.mrb[58].mxu1 }
 0x14b   :  { %v1304_v46 = vadd.f32 %v1303_v29, %v1302_v37  ;;  %v1247_v2 = vadd.f32 %v1246_v58, %v1245_v10  ;;  %v447_v56 = vadd.f32 %v446_v50, %v1974_v49  ;;  %v674_v36 = vpop.f32.mrb[22].mxu0  ;;  %v1535_v7 = vpop.f32.mrb[59].mxu1  ;;  %v1134_v3 = vsel %vm2476_vm11, %v2450_v4, %v2347_v20 }
 0x14c   :  { %v1305_v63 = vsel %vm64_vm2, %v1280_v45, 0.0  ;;  %v741_v39 = vsel %vm720_vm12, %v738_v25, %v740_v60  ;;  %v742_v33 = vrot.slane %v674_v36, 1  ;;  %v1611_v16 = vpop.f32.mrb[23].mxu0  ;;  %v1135_v59 = vsel %vm2485_vm14, %v2457_v23, %v2417_v26 }
 0x14d   :  { %v1306_v17 = vadd.f32 %v1305_v63, %v1304_v46  ;;  %v785_v37 = vadd.f32 %v741_v39, %v439_v31  ;;  %vm1064_vm1 = vcmp.ne.s32.totalorder %v2468_v38, 0  ;;  %vm1082_vm13 = vcmp.lt.s32.totalorder %v2468_v38, 0 }
 0x14e   :  { %v743_v41 = vsel %vm720_vm12, %v740_v60, %v742_v33  ;;  %v1024_v11 = vmul.u32 9, %v1023_v52  ;;  %v2526_v20 = vadd.s32 9, %v2468_v38  ;;  %v1045_v54 = vshrl.u32 %v2462_v22, 3  ;;  %vm2539_vm6 = vmand %vm1082_vm13, %vm1064_vm1 }
 0x14f   :  { %v1221_v9 = vsel %vm2436_vm5, %v785_v37, 0.0  ;;  %v786_v5 = vadd.f32 %v743_v41, %v444_v47  ;;  %v1035_v4 = vmul.u32 9, %v1034_v19  ;;  %vm1152_vm7 = vcmp.ne.s32.totalorder %v1134_v3, 8 }
 0x150   :  { %v1248_v12 = vsel %vm64_vm2, %v1221_v9, 0.0  ;;  %v1281_v31 = vmul.f32 %v1221_v9, %v1221_v9  ;;  %v451_v25 = vpop.f32.mrb[60].mxu1  ;;  %v2544_v62 = vsub.s32 %v2371_v32, %v1024_v11  ;;  %vm2552_vm3 = vcmp.ne.s32.totalorder %v1135_v59, 8 }
 0x151   :  { %v1249_v42 = vadd.f32 %v1248_v12, %v1247_v2  ;;  %v1222_v26 = vsel %vm2497_vm15, %v786_v5, 0.0  ;;  %v452_v53 = vadd.f32 %v451_v25, %v1986_v57  ;;  %v679_v0 = vpop.f32.mrb[24].mxu0  ;;  %v1538_v8 = vpop.f32.mrb[61].mxu1  ;;  %v2549_v50 = vsub.s32 %v2429_v13, %v1035_v4 }
 0x152   :  { %v1307_v1 = vsel %vm64_vm2, %v1281_v31, 0.0  ;;  %v1250_v44 = vsel %vm64_vm2, %v1222_v26, 0.0  ;;  %v1282_v23 = vmul.f32 %v1222_v26, %v1222_v26  ;;  %v744_v48 = vrot.slane %v679_v0, 1  ;;  %v1614_v15 = vpop.f32.mrb[25].mxu0  ;;  %v454_v30 = vpop.f32.mrb[62].mxu1 }
 0x153   :  { %v1308_v27 = vadd.f32 %v1307_v1, %v1306_v17  ;;  %v1251_v10 = vadd.f32 %v1250_v44, %v1249_v42  ;;  %v455_v22 = vadd.f32 %v454_v30, %v1994_v61  ;;  %v682_v18 = vpop.f32.mrb[26].mxu0  ;;  %v1539_v47 = vpop.f32.mrb[63].mxu1  ;;  %v1046_v61 = vmul.u32 9, %v1045_v54 }
 0x154   :  { %v1309_v6 = vsel %vm64_vm2, %v1282_v23, 0.0  ;;  %v745_v29 = vsel %vm720_vm12, %v742_v33, %v744_v48  ;;  %v746_v58 = vrot.slane %v682_v18, 1  ;;  %v1615_v45 = vpop.f32.mrb[27].mxu0  ;;  %v1136_v32 = vsel %vm2539_vm6, %v2526_v20, %v2468_v38 }
 0x155   :  { %v1310_v60 = vadd.f32 %v1309_v6, %v1308_v27  ;;  %v787_v34 = vadd.f32 %v745_v29, %v447_v56  ;;  %vm1065_vm4 = vcmp.ne.s32.totalorder %v2544_v62, 0  ;;  %vm1083_vm5 = vcmp.lt.s32.totalorder %v2544_v62, 0 }
 0x156   :  { %v747_v24 = vsel %vm720_vm12, %v744_v48, %v746_v58  ;;  %v1119_v35 = vadd.s32 9, %v2544_v62  ;;  %v2567_v52 = vsub.s32 %v2441_v40, %v1046_v61  ;;  %vm1066_vm8 = vcmp.ne.s32.totalorder %v2549_v50, 0  ;;  %vm2582_vm10 = vmand %vm1083_vm5, %vm1065_vm4 }
 0x157   :  { %v1223_v2 = vsel %vm2506_vm0, %v787_v34, 0.0  ;;  %v788_v36 = vadd.f32 %v747_v24, %v452_v53  ;;  %vm1084_vm9 = vcmp.lt.s32.totalorder %v2549_v50, 0  ;;  %v1120_v25 = vadd.s32 9, %v2549_v50 }
 0x158   :  { %v1252_v13 = vsel %vm64_vm2, %v1223_v2, 0.0  ;;  %v1283_v56 = vmul.f32 %v1223_v2, %v1223_v2  ;;  %v459_v7 = vpop.f32.mrb[64].mxu1  ;;  %vm1067_vm11 = vcmp.ne.s32.totalorder %v2567_v52, 0  ;;  %vm1085_vm14 = vcmp.lt.s32.totalorder %v2567_v52, 0  ;;  %vm2591_vm0 = vmand %vm1084_vm9, %vm1066_vm8 }
 0x159   :  { %v1253_v63 = vadd.f32 %v1252_v13, %v1251_v10  ;;  %v1224_v39 = vsel %vm1152_vm7, %v788_v36, 0.0  ;;  %v460_v38 = vadd.f32 %v459_v7, %v2023_v14  ;;  %v687_v33 = vpop.f32.mrb[28].mxu0  ;;  %v1542_v49 = vpop.f32.mrb[65].mxu1  ;;  %vm1154_vm15 = vcmp.ne.s32.totalorder %v1136_v32, 8  ;;  %vm2602_vm1 = vmand %vm1085_vm14, %vm1067_vm11 }
 0x15a   :  { %v1311_v16 = vsel %vm64_vm2, %v1283_v56, 0.0  ;;  %v1254_v17 = vsel %vm64_vm2, %v1224_v39, 0.0  ;;  %v1284_v37 = vmul.f32 %v1224_v39, %v1224_v39  ;;  %v748_v51 = vrot.slane %v687_v33, 1  ;;  %v1618_v19 = vpop.f32.mrb[29].mxu0  ;;  %v462_v41 = vpop.f32.mrb[66].mxu1 }
 0x15b   :  { %v1312_v3 = vadd.f32 %v1311_v16, %v1310_v60  ;;  %v1255_v59 = vadd.f32 %v1254_v17, %v1253_v63  ;;  %v463_v40 = vadd.f32 %v462_v41, %v2033_v21  ;;  %v690_v9 = vpop.f32.mrb[30].mxu0  ;;  %v1543_v5 = vpop.f32.mrb[67].mxu1  ;;  %v1121_v8 = vadd.s32 9, %v2567_v52 }
 0x15c   :  { %v1313_v14 = vsel %vm64_vm2, %v1284_v37, 0.0  ;;  %v749_v11 = vsel %vm720_vm12, %v746_v58, %v748_v51  ;;  %v750_v12 = vrot.slane %v690_v9, 1  ;;  %v1619_v31 = vpop.f32.mrb[31].mxu0  ;;  %v1137_v23 = vsel %vm2582_vm10, %v1119_v35, %v2544_v62 }
 0x15d   :  { %v1314_v20 = vadd.f32 %v1313_v14, %v1312_v3  ;;  %v789_v54 = vadd.f32 %v749_v11, %v455_v22  ;;  %v1138_v18 = vsel %vm2591_vm0, %v1120_v25, %v2549_v50  ;;  %vm1155_vm13 = vcmp.ne.s32.totalorder %v1137_v23, 8 }
 0x15e   :  { %v751_v42 = vsel %vm720_vm12, %v748_v51, %v750_v12  ;;  %v2708_v7 = vrot.slane %v2133_v28, 1  ;;  %vm1156_vm6 = vcmp.ne.s32.totalorder %v1138_v18, 8 }
 0x15f   :  { %v1225_v53 = vsel %vm2552_vm3, %v789_v54, 0.0  ;;  %v790_v0 = vadd.f32 %v751_v42, %v460_v38  ;;  %vm1335_vm3 = vcmask 58368  }
 0x160   :  { %v1256_v4 = vsel %vm64_vm2, %v1225_v53, 0.0  ;;  %v1285_v1 = vmul.f32 %v1225_v53, %v1225_v53  ;;  %v467_v44 = vpop.f32.mrb[68].mxu1 }
 0x161   :  { %v1257_v15 = vadd.f32 %v1256_v4, %v1255_v59  ;;  %v1226_v30 = vsel %vm1154_vm15, %v790_v0, 0.0  ;;  %v468_v27 = vadd.f32 %v467_v44, %v2052_v43  ;;  %v695_v10 = vpop.f32.mrb[32].mxu0  ;;  %v1546_v22 = vpop.f32.mrb[69].mxu1  ;;  %v1139_v43 = vsel %vm2602_vm1, %v1121_v8, %v2567_v52  ;;  %v1333_v4 = vld [vmem:[#allocation2] sm:$0x3] }
 0x162   :  { %v1315_v47 = vsel %vm64_vm2, %v1285_v1, 0.0  ;;  %v1258_v57 = vsel %vm64_vm2, %v1226_v30, 0.0  ;;  %v1286_v6 = vmul.f32 %v1226_v30, %v1226_v30  ;;  %v752_v62 = vrot.slane %v695_v10, 1  ;;  %v1622_v29 = vpop.f32.mrb[33].mxu0  ;;  %v470_v58 = vpop.f32.mrb[70].mxu1 }
 0x163   :  { %v1316_v45 = vadd.f32 %v1315_v47, %v1314_v20  ;;  %v1259_v61 = vadd.f32 %v1258_v57, %v1257_v15  ;;  %v471_v60 = vadd.f32 %v470_v58, %v2066_v55  ;;  %v698_v34 = vpop.f32.mrb[34].mxu0  ;;  %v1547_v24 = vpop.f32.mrb[71].mxu1  ;;  %vm1157_vm7 = vcmp.ne.s32.totalorder %v1139_v43, 8 }
 0x164   :  { %v1317_v50 = vsel %vm64_vm2, %v1286_v6, 0.0  ;;  %v753_v46 = vsel %vm720_vm12, %v750_v12, %v752_v62  ;;  %v754_v32 = vrot.slane %v698_v34, 1  ;;  %v1623_v2 = vpop.f32.mrb[35].mxu0 }
 0x165   :  { %v1318_v36 = vadd.f32 %v1317_v50, %v1316_v45  ;;  %v791_v13 = vadd.f32 %v753_v46, %v463_v40 }
 0x166   :  { %v755_v56 = vsel %vm720_vm12, %v752_v62, %v754_v32  ;;  %v775_v55 = vsel %vm720_vm12, %v754_v32, %v2708_v7  ;;  %vm1331_vm12 = vcmask 1040384  }
 0x167   :  { %v1227_v35 = vsel %vm1155_vm13, %v791_v13, 0.0  ;;  %v792_v52 = vadd.f32 %v755_v56, %v468_v27  ;;  %v793_v63 = vadd.f32 %v775_v55, %v471_v60 }
 0x168   :  { %v1260_v39 = vsel %vm64_vm2, %v1227_v35, 0.0  ;;  %v1287_v38 = vmul.f32 %v1227_v35, %v1227_v35 }
 0x169   :  { %v1261_v33 = vadd.f32 %v1260_v39, %v1259_v61  ;;  %v1228_v49 = vsel %vm1156_vm6, %v792_v52, 0.0  ;;  %v1229_v16 = vsel %vm1157_vm7, %v793_v63, 0.0 }
 0x16a   :  { %v1319_v17 = vsel %vm64_vm2, %v1287_v38, 0.0  ;;  %v1262_v37 = vsel %vm64_vm2, %v1228_v49, 0.0  ;;  %v1288_v51 = vmul.f32 %v1228_v49, %v1228_v49  ;;  %v1289_v41 = vmul.f32 %v1229_v16, %v1229_v16 }
 0x16b   :  { %v1320_v19 = vadd.f32 %v1319_v17, %v1318_v36  ;;  %v1263_v28 = vadd.f32 %v1262_v37, %v1261_v33  ;;  %v1264_v3 = vsel %vm64_vm2, %v1229_v16, 0.0 }
 0x16c   :  { %v1321_v59 = vsel %vm64_vm2, %v1288_v51, 0.0  ;;  %v1323_v5 = vsel %vm64_vm2, %v1289_v41, 0.0 }
 0x16d   :  { %v1265_v40 = vadd.f32 %v1264_v3, %v1263_v28  ;;  %v1322_v9 = vadd.f32 %v1321_v59, %v1320_v19 }
 0x16f   :  { %v1266_v14 = vrot.slane %v1265_v40, 4  ;;  %v1324_v11 = vadd.f32 %v1323_v5, %v1322_v9 }
 0x171   :  { %v1267_v12 = vadd.f32 %v1266_v14, %v1265_v40  ;;  %v1325_v31 = vrot.slane %v1324_v11, 4 }
 0x173   :  { %v1268_v25 = vrot.slane %v1267_v12, 2  ;;  %v1326_v20 = vadd.f32 %v1325_v31, %v1324_v11 }
 0x175   :  { %v1269_v54 = vadd.f32 %v1268_v25, %v1267_v12  ;;  %v1327_v21 = vrot.slane %v1326_v20, 2 }
 0x177   :  { %v1270_v42 = vrot.slane %v1269_v54, 1  ;;  %v1328_v26 = vadd.f32 %v1327_v21, %v1326_v20 }
 0x179   :  { %v1329_v53 = vrot.slane %v1328_v26, 1  ;;  %v1271_v0 = vadd.f32 %v1270_v42, %v1269_v54 }
 0x17b   :  { %v1330_v8 = vadd.f32 %v1329_v53, %v1328_v26 }
 0x17d   :  { %v1332_v1 = vsel %vm1331_vm12, %v1271_v0, %v1330_v8 }
 0x17e   :  { %v1334_v44 = vadd.f32 %v1333_v4, %v1332_v1 }
 0x180   :  { %1336 = vst.msk [vmem:[#allocation2] sm:$0x3] %vm1335_vm3, %v1334_v44 }
 0x187   :  { %v1340_v23 = vld [vmem:[#allocation2] sm:$0xff] }
 0x188   :  { %1341 = vst.msk [vmem:[#allocation3] sm:$0xff] %vm64_vm2, %v1340_v23 }
 0x189   :  { %1732 = shalt.err (!%p1729_p4)
}
 0x18a   :  { %s1733_s30 = scalar_lea.hbm %s2644_s3, 128 }
 0x18b   :  { %p1734_p5 = scmp.ne.s32.totalorder %s2644_s3, %s1733_s30  ;;  %p1737_p6 = scmp.lt.u32.totalorder %s1733_s30, %s2644_s3 }
 0x18d   :  { %p1739_p7 = pnand %p1737_p6, %p1734_p5 }
 0x18f   :  { %1742 = shalt.err (!%p1739_p7)
}
 0x190   :  { %1351 = dma.vmem_to_hbm [thread:$0]  %s1349_s26, 128, %s2644_s3, [#allocation4]  }
 0x191   :  { %1743 = dma.done.wait [#allocation4], 128  }
 0x192   :  { %1744 = vsyncadd [#allocation4], 4294967168 }
 0x193   :  { %1355 = vsyncpa [#allocation4], 1 }

</bundles_post_ra>
